<compile_context>
chip_gen: v6e
topology: v6e:2x2x1
jax: 0.10.0
libtpu: 0.0.40
codegen_flags: <defaults>
</compile_context>

<pallas_src>
import functools

import jax
import jax.numpy as jnp
from jax.experimental import pallas as pl
from jax.experimental.pallas import tpu as pltpu


# ---------------------------------------------------------------------------
# Fused kernel: one batch element per grid step.
# ---------------------------------------------------------------------------
def _fused_se_conv_kernel(s_ref, x_ref, w_ref, b_ref, row_ref, col_ref, o_ref,
                          *, H, W, slope):
    """Gate-scaled, reflect-padded 3x3 conv + bias + LeakyReLU.

    s_ref   : (1, 1, 3*Cin)        SE gate tiled per horizontal tap
    x_ref   : (1, Cin, H*W)        raw activation, spatially flattened NCHW
    w_ref   : (KH, Cout, 3*Cin)    conv weights, row-major taps, KW stacked in K
    b_ref   : (Cout, 1)            conv bias
    row_ref : (1, H*W) int32       p // W
    col_ref : (1, H*W) int32       p %  W
    o_ref   : (1, Cout, H*W)
    """
    Cin, P = x_ref.shape[1], x_ref.shape[2]
    Cout = o_ref.shape[1]

    xf = x_ref[0]                                     # (Cin, P), lanes = H*W
    # Fold the SE gate into the conv weights: conv(w, s*x) == conv(w*s, x).
    wg = w_ref[...] * s_ref[0]                        # (KH, Cout, 3*Cin)

    # Border masks for the reflection fix-ups (hoisted, computed once).
    row = row_ref[...]
    col = col_ref[...]
    first_col = jnp.broadcast_to(col == 0,     (Cin, P))
    last_col  = jnp.broadcast_to(col == W - 1, (Cin, P))
    first_row = jnp.broadcast_to(row == 0,     (3 * Cin, P))
    last_row  = jnp.broadcast_to(row == H - 1, (3 * Cin, P))

    # Horizontal taps: +/-1 lane rolls (XLU) + column reflection at the border
    # (pad 1: column -1 -> 1, column W -> W-2).
    xl_raw = pltpu.roll(xf, shift=1,     axis=1)      # value from column c-1
    xr_raw = pltpu.roll(xf, shift=P - 1, axis=1)      # value from column c+1
    xl = jnp.where(first_col, xr_raw, xl_raw)
    xr = jnp.where(last_col,  xl_raw, xr_raw)

    # Stack the three horizontal taps along the contraction axis (sublane
    # aligned when Cin % 8 == 0): K grows Cin -> 3*Cin, so the 3x3 conv becomes
    # 3 MXU matmuls instead of 9.
    xc = jnp.concatenate([xl, xf, xr], axis=0)        # (3*Cin, P)

    # Vertical taps: +/-W lane rolls of the stacked tile + row reflection
    # (row -1 -> 1, row H -> H-2).
    xt_raw = pltpu.roll(xc, shift=W,     axis=1)      # value from row r-1
    xb_raw = pltpu.roll(xc, shift=P - W, axis=1)      # value from row r+1
    xt = jnp.where(first_row, xb_raw, xt_raw)
    xb = jnp.where(last_row,  xt_raw, xb_raw)

    acc = jnp.dot(wg[0], xt, preferred_element_type=jnp.float32)   # kh = 0
    acc = acc + jnp.dot(wg[1], xc, preferred_element_type=jnp.float32)  # kh = 1
    acc = acc + jnp.dot(wg[2], xb, preferred_element_type=jnp.float32)  # kh = 2

    acc = acc + b_ref[...]                            # (Cout, 1) broadcast
    acc = jnp.where(acc > 0, acc, slope * acc)        # LeakyReLU(0.2)
    o_ref[0] = acc.astype(o_ref.dtype)


# ---------------------------------------------------------------------------
# Wrapper: Aggreation.forward (NCHW in / NCHW out, PyTorch convention).
# ---------------------------------------------------------------------------
def aggreation_forward(x, params, *, slope=0.2):
    N, Cin, H, W = x.shape
    conv_w = params["conv_w"]                         # (Cout, Cin, KH, KW) OIHW
    Cout, _, KH, KW = conv_w.shape
    assert (KH, KW) == (3, 3), "implemented for the module default 3x3 / pad 1"
    # TODO(synk): larger kernel sizes need deeper reflection fix-ups.
    assert H >= 2 and W >= 2, "ReflectionPad2d(1) needs H, W >= 2"
    P = H * W

    # SE gate, batched over N in plain XLA (tiny matmuls).
    pooled = jnp.mean(x, axis=(2, 3))                                # (N, Cin)
    hid = jnp.maximum(pooled @ params["w1"].T + params["b1"], 0.0)
    gate = jax.nn.sigmoid(hid @ params["w2"].T + params["b2"])       # (N, Cin)

    # Layout plumbing: free reshapes / tiny constants, no extra HBM passes.
    xf = x.reshape(N, Cin, P)
    # Gate tiled per horizontal tap to match the K-stacked weight layout.
    gate3 = jnp.tile(gate, (1, KW)).reshape(N, 1, KW * Cin).astype(x.dtype)
    # OIHW -> (kh, out, kw, in) -> (KH, Cout, KW*Cin); K index = kw*Cin + cin.
    w_stack = jnp.transpose(conv_w, (2, 0, 3, 1)).reshape(KH, Cout, KW * Cin)
    bias2d = params["conv_b"].reshape(Cout, 1)
    pos = jnp.arange(P, dtype=jnp.int32)
    row_idx = (pos // W).reshape(1, P)
    col_idx = (pos % W).reshape(1, P)

    # Raise the scoped VMEM limit for larger images (defaults: 16 MiB v5e,
    # 32 MiB v6e/v7x).  TODO(synk): for very large H*W switch to halo'd
    # row-band tiling (grid (N, H//tile_h)) so blocks fit v7x's 64 MiB VMEM and
    # both of its TensorCores get work when N == 1.
    io_bytes = 4 * P * (Cin + Cout)                   # x tile + out tile
    work_bytes = 4 * P * Cin * 14                     # rolled/stacked scratch
    vmem_limit = int(min(max(2 * io_bytes + work_bytes + (8 << 20), 32 << 20),
                         64 << 20))

    kern = functools.partial(_fused_se_conv_kernel, H=H, W=W, slope=slope)
    out_flat = pl.pallas_call(
        kern,
        out_shape=jax.ShapeDtypeStruct((N, Cout, P), x.dtype),
        grid=(N,),
        in_specs=[
            pl.BlockSpec((1, 1, KW * Cin), lambda n: (n, 0, 0)),       # gate
            pl.BlockSpec((1, Cin, P), lambda n: (n, 0, 0)),            # x
            pl.BlockSpec((KH, Cout, KW * Cin), lambda n: (0, 0, 0)),   # weights
            pl.BlockSpec((Cout, 1), lambda n: (0, 0)),                 # bias
            pl.BlockSpec((1, P), lambda n: (0, 0)),                    # row idx
            pl.BlockSpec((1, P), lambda n: (0, 0)),                    # col idx
        ],
        out_specs=pl.BlockSpec((1, Cout, P), lambda n: (n, 0, 0)),
        compiler_params=pltpu.CompilerParams(
            dimension_semantics=("parallel",),
            vmem_limit_bytes=vmem_limit),
    )(gate3, xf, w_stack, bias2d, row_idx, col_idx)
    return out_flat.reshape(N, Cout, H, W)


# ---------------------------------------------------------------------------
# Pure-JAX reference (correctness check)
# ---------------------------------------------------------------------------
def _reference(x, p):
    pooled = jnp.mean(x, axis=(2, 3))
    hid = jnp.maximum(pooled @ p["w1"].T + p["b1"], 0.0)
    gate = jax.nn.sigmoid(hid @ p["w2"].T + p["b2"])
    y = x * gate[:, :, None, None]
    yp = jnp.pad(y, ((0, 0), (0, 0), (1, 1), (1, 1)), mode="reflect")
    out = jax.lax.conv_general_dilated(
        yp, p["conv_w"], window_strides=(1, 1), padding="VALID",
        dimension_numbers=("NCHW", "OIHW", "NCHW"),
        precision=jax.lax.Precision.HIGHEST)
    out = out + p["conv_b"].reshape(1, -1, 1, 1)
    return jnp.where(out > 0, out, 0.2 * out)


# ---------------------------------------------------------------------------
if __name__ == "__main__":
    N, C, H, W = 2, 16, 16, 16       # SelfAttention(k=8) needs C >= 8
    Cout = 24
    hidden = C // 8

    key = jax.random.PRNGKey(0)
    kx, k1, k2, k3, k4, k5, k6 = jax.random.split(key, 7)
    x = jax.random.normal(kx, (N, C, H, W), jnp.float32)
    params = {
        # PyTorch layouts: Linear (out, in), Conv2d (out, in, kh, kw).
        "w1": jax.random.normal(k1, (hidden, C), jnp.float32) * 0.3,
        "b1": jax.random.normal(k2, (hidden,), jnp.float32) * 0.1,
        "w2": jax.random.normal(k3, (C, hidden), jnp.float32) * 0.3,
        "b2": jax.random.normal(k4, (C,), jnp.float32) * 0.1,
        "conv_w": jax.random.normal(k5, (Cout, C, 3, 3), jnp.float32) * 0.1,
        "conv_b": jax.random.normal(k6, (Cout,), jnp.float32) * 0.1,
    }

    fwd = jax.jit(aggreation_forward)
    out = jax.block_until_ready(fwd(x, params))
    ref = jax.block_until_ready(_reference(x, params))

    assert out.shape == (N, Cout, H, W), out.shape
    err = float(jnp.max(jnp.abs(out - ref)))
    assert jnp.allclose(out, ref, atol=2e-4, rtol=2e-4), f"max abs err {err}"
    print("KERNEL_OK")
</pallas_src>

<mosaic_0001>
module attributes {stable_mosaic.version = 11 : i64} {
  func.func @_fused_se_conv_kernel(%arg0: i32, %arg1: memref<1x1x48xf32, #tpu.memory_space<vmem>>, %arg2: memref<1x16x256xf32, #tpu.memory_space<vmem>>, %arg3: memref<3x24x48xf32, #tpu.memory_space<vmem>>, %arg4: memref<24x1xf32, #tpu.memory_space<vmem>>, %arg5: memref<1x256xi32, #tpu.memory_space<vmem>>, %arg6: memref<1x256xi32, #tpu.memory_space<vmem>>, %arg7: memref<1x24x256xf32, #tpu.memory_space<vmem>>) attributes {dimension_semantics = [#tpu.dimension_semantics<parallel>], iteration_bounds = array<i64: 2>, scalar_prefetch = 0 : i64, scratch_operands = 0 : i64, tpu.core_type = #tpu.core_type<tc>, window_params = [{transform_indices = @transform_0, window_bounds = array<i64: 1, 1, 48>}, {transform_indices = @transform_1, window_bounds = array<i64: 1, 16, 256>}, {pipeline_mode = #tpu.pipeline_mode<synchronous>, transform_indices = @transform_2, window_bounds = array<i64: 3, 24, 48>}, {pipeline_mode = #tpu.pipeline_mode<synchronous>, transform_indices = @transform_3, window_bounds = array<i64: 24, 1>}, {pipeline_mode = #tpu.pipeline_mode<synchronous>, transform_indices = @transform_4, window_bounds = array<i64: 1, 256>}, {pipeline_mode = #tpu.pipeline_mode<synchronous>, transform_indices = @transform_5, window_bounds = array<i64: 1, 256>}, {transform_indices = @transform_6, window_bounds = array<i64: 1, 24, 256>}]} {
    %c0 = arith.constant 0 : index
    %c0_0 = arith.constant 0 : index
    %c0_1 = arith.constant 0 : index
    %0 = vector.load %arg2[%c0, %c0_0, %c0_1] : memref<1x16x256xf32, #tpu.memory_space<vmem>>, vector<1x16x256xf32>
    %1 = vector.shape_cast %0 : vector<1x16x256xf32> to vector<16x256xf32>
    %c0_2 = arith.constant 0 : index
    %c0_3 = arith.constant 0 : index
    %c0_4 = arith.constant 0 : index
    %2 = vector.load %arg3[%c0_2, %c0_3, %c0_4] : memref<3x24x48xf32, #tpu.memory_space<vmem>>, vector<3x24x48xf32>
    %c0_5 = arith.constant 0 : index
    %c0_6 = arith.constant 0 : index
    %c0_7 = arith.constant 0 : index
    %3 = vector.load %arg1[%c0_5, %c0_6, %c0_7] : memref<1x1x48xf32, #tpu.memory_space<vmem>>, vector<1x1x48xf32>
    %4 = vector.shape_cast %3 : vector<1x1x48xf32> to vector<1x48xf32>
    %5 = vector.shape_cast %4 : vector<1x48xf32> to vector<1x1x48xf32>
    %6 = vector.broadcast %5 : vector<1x1x48xf32> to vector<3x24x48xf32>
    %7 = arith.mulf %2, %6 : vector<3x24x48xf32>
    %c0_8 = arith.constant 0 : index
    %c0_9 = arith.constant 0 : index
    %8 = vector.load %arg5[%c0_8, %c0_9] : memref<1x256xi32, #tpu.memory_space<vmem>>, vector<1x256xi32>
    %c0_10 = arith.constant 0 : index
    %c0_11 = arith.constant 0 : index
    %9 = vector.load %arg6[%c0_10, %c0_11] : memref<1x256xi32, #tpu.memory_space<vmem>>, vector<1x256xi32>
    %c0_i32 = arith.constant 0 : i32
    %10 = vector.broadcast %c0_i32 : i32 to vector<1x256xi32>
    %11 = arith.cmpi eq, %9, %10 : vector<1x256xi32>
    %12 = vector.shape_cast %11 : vector<1x256xi1> to vector<1x256xi1>
    %13 = vector.broadcast %12 : vector<1x256xi1> to vector<16x256xi1>
    %c15_i32 = arith.constant 15 : i32
    %14 = vector.broadcast %c15_i32 : i32 to vector<1x256xi32>
    %15 = arith.cmpi eq, %9, %14 : vector<1x256xi32>
    %16 = vector.shape_cast %15 : vector<1x256xi1> to vector<1x256xi1>
    %17 = vector.broadcast %16 : vector<1x256xi1> to vector<16x256xi1>
    %c0_i32_12 = arith.constant 0 : i32
    %18 = vector.broadcast %c0_i32_12 : i32 to vector<1x256xi32>
    %19 = arith.cmpi eq, %8, %18 : vector<1x256xi32>
    %20 = vector.shape_cast %19 : vector<1x256xi1> to vector<1x256xi1>
    %21 = vector.broadcast %20 : vector<1x256xi1> to vector<48x256xi1>
    %c15_i32_13 = arith.constant 15 : i32
    %22 = vector.broadcast %c15_i32_13 : i32 to vector<1x256xi32>
    %23 = arith.cmpi eq, %8, %22 : vector<1x256xi32>
    %24 = vector.shape_cast %23 : vector<1x256xi1> to vector<1x256xi1>
    %25 = vector.broadcast %24 : vector<1x256xi1> to vector<48x256xi1>
    %c1_i32 = arith.constant 1 : i32
    %26 = tpu.dynamic_rotate %1 by %c1_i32 dim 1 : vector<16x256xf32>, i32 -> vector<16x256xf32>
    %c255_i32 = arith.constant 255 : i32
    %27 = tpu.dynamic_rotate %1 by %c255_i32 dim 1 : vector<16x256xf32>, i32 -> vector<16x256xf32>
    %28 = arith.select %13, %27, %26 : vector<16x256xi1>, vector<16x256xf32>
    %29 = arith.select %17, %26, %27 : vector<16x256xi1>, vector<16x256xf32>
    %30 = tpu.concatenate %28, %1, %29 in 0 : vector<16x256xf32>, vector<16x256xf32>, vector<16x256xf32> -> vector<48x256xf32>
    %c16_i32 = arith.constant 16 : i32
    %31 = tpu.dynamic_rotate %30 by %c16_i32 dim 1 : vector<48x256xf32>, i32 -> vector<48x256xf32>
    %c240_i32 = arith.constant 240 : i32
    %32 = tpu.dynamic_rotate %30 by %c240_i32 dim 1 : vector<48x256xf32>, i32 -> vector<48x256xf32>
    %33 = arith.select %21, %32, %31 : vector<48x256xi1>, vector<48x256xf32>
    %34 = arith.select %25, %31, %32 : vector<48x256xi1>, vector<48x256xf32>
    %35 = vector.extract_strided_slice %7 {offsets = [0, 0, 0], sizes = [1, 24, 48], strides = [1, 1, 1]} : vector<3x24x48xf32> to vector<1x24x48xf32>
    %36 = vector.shape_cast %35 : vector<1x24x48xf32> to vector<24x48xf32>
    %cst = arith.constant dense<0.000000e+00> : vector<24x256xf32>
    %37 = tpu.matmul %36, %33, %cst {dimension_numbers = #tpu.dot_dimension_numbers<[1], [0], [0], [1], [0, 0, 1, 1], [], []>} : vector<24x48xf32>, vector<48x256xf32>, vector<24x256xf32> -> vector<24x256xf32>
    %38 = vector.extract_strided_slice %7 {offsets = [1, 0, 0], sizes = [1, 24, 48], strides = [1, 1, 1]} : vector<3x24x48xf32> to vector<1x24x48xf32>
    %39 = vector.shape_cast %38 : vector<1x24x48xf32> to vector<24x48xf32>
    %cst_14 = arith.constant dense<0.000000e+00> : vector<24x256xf32>
    %40 = tpu.matmul %39, %30, %cst_14 {dimension_numbers = #tpu.dot_dimension_numbers<[1], [0], [0], [1], [0, 0, 1, 1], [], []>} : vector<24x48xf32>, vector<48x256xf32>, vector<24x256xf32> -> vector<24x256xf32>
    %41 = arith.addf %37, %40 : vector<24x256xf32>
    %42 = vector.extract_strided_slice %7 {offsets = [2, 0, 0], sizes = [1, 24, 48], strides = [1, 1, 1]} : vector<3x24x48xf32> to vector<1x24x48xf32>
    %43 = vector.shape_cast %42 : vector<1x24x48xf32> to vector<24x48xf32>
    %cst_15 = arith.constant dense<0.000000e+00> : vector<24x256xf32>
    %44 = tpu.matmul %43, %34, %cst_15 {dimension_numbers = #tpu.dot_dimension_numbers<[1], [0], [0], [1], [0, 0, 1, 1], [], []>} : vector<24x48xf32>, vector<48x256xf32>, vector<24x256xf32> -> vector<24x256xf32>
    %45 = arith.addf %41, %44 : vector<24x256xf32>
    %c0_16 = arith.constant 0 : index
    %c0_17 = arith.constant 0 : index
    %46 = vector.load %arg4[%c0_16, %c0_17] : memref<24x1xf32, #tpu.memory_space<vmem>>, vector<24x1xf32>
    %47 = vector.broadcast %46 : vector<24x1xf32> to vector<24x256xf32>
    %48 = arith.addf %45, %47 : vector<24x256xf32>
    %cst_18 = arith.constant 0.000000e+00 : f32
    %49 = vector.broadcast %cst_18 : f32 to vector<24x256xf32>
    %50 = arith.cmpf ogt, %48, %49 : vector<24x256xf32>
    %cst_19 = arith.constant 2.000000e-01 : f32
    %51 = vector.broadcast %cst_19 : f32 to vector<24x256xf32>
    %52 = arith.mulf %51, %48 : vector<24x256xf32>
    %53 = arith.select %50, %48, %52 : vector<24x256xi1>, vector<24x256xf32>
    %c0_20 = arith.constant 0 : index
    %c0_21 = arith.constant 0 : index
    %c0_22 = arith.constant 0 : index
    %54 = vector.load %arg7[%c0_20, %c0_21, %c0_22] : memref<1x24x256xf32, #tpu.memory_space<vmem>>, vector<1x24x256xf32>
    %55 = vector.shape_cast %54 : vector<1x24x256xf32> to vector<24x256xf32>
    %56 = vector.shape_cast %53 : vector<24x256xf32> to vector<1x24x256xf32>
    tpu.vector_store %arg7[%c0_20, %c0_21, %c0_22], %56 {strides = array<i32>} : memref<1x24x256xf32, #tpu.memory_space<vmem>>, vector<1x24x256xf32>,
    return
  }
  func.func @transform_0(%arg0: i32) -> (i32, i32, i32) {
    %c0_i32 = arith.constant 0 : i32
    %c0_i32_0 = arith.constant 0 : i32
    %c0_i32_1 = arith.constant 0 : i32
    return %arg0, %c0_i32, %c0_i32_0 : i32, i32, i32
  }
  func.func @transform_1(%arg0: i32) -> (i32, i32, i32) {
    %c0_i32 = arith.constant 0 : i32
    %c0_i32_0 = arith.constant 0 : i32
    %c0_i32_1 = arith.constant 0 : i32
    return %arg0, %c0_i32, %c0_i32_0 : i32, i32, i32
  }
  func.func @transform_2(%arg0: i32) -> (i32, i32, i32) {
    %c0_i32 = arith.constant 0 : i32
    %c0_i32_0 = arith.constant 0 : i32
    %c0_i32_1 = arith.constant 0 : i32
    %c0_i32_2 = arith.constant 0 : i32
    return %c0_i32, %c0_i32_0, %c0_i32_1 : i32, i32, i32
  }
  func.func @transform_3(%arg0: i32) -> (i32, i32) {
    %c0_i32 = arith.constant 0 : i32
    %c0_i32_0 = arith.constant 0 : i32
    %c0_i32_1 = arith.constant 0 : i32
    return %c0_i32, %c0_i32_0 : i32, i32
  }
  func.func @transform_4(%arg0: i32) -> (i32, i32) {
    %c0_i32 = arith.constant 0 : i32
    %c0_i32_0 = arith.constant 0 : i32
    %c0_i32_1 = arith.constant 0 : i32
    return %c0_i32, %c0_i32_0 : i32, i32
  }
  func.func @transform_5(%arg0: i32) -> (i32, i32) {
    %c0_i32 = arith.constant 0 : i32
    %c0_i32_0 = arith.constant 0 : i32
    %c0_i32_1 = arith.constant 0 : i32
    return %c0_i32, %c0_i32_0 : i32, i32
  }
  func.func @transform_6(%arg0: i32) -> (i32, i32, i32) {
    %c0_i32 = arith.constant 0 : i32
    %c0_i32_0 = arith.constant 0 : i32
    %c0_i32_1 = arith.constant 0 : i32
    return %arg0, %c0_i32, %c0_i32_0 : i32, i32, i32
  }
}

</mosaic_0001>

<bundles_post_ra>
// kernel: aggreation_forward.1
= control target key start
LH: loop header
LB: loop body
LE: loop exit
PB: predicated region body
PF: predicated region fallthrough
CT: control target
= control target key end

     0   :  { %s973_s21 = smov 0   ;;  %s1321_s0 = inlined_call_operand.vmem [shape: f32[2,1,48], index: 0, kind: input, shape index: {}]   ;;  %s1322_s1 = inlined_call_operand.vmem [shape: f32[2,16,256], index: 1, kind: input, shape index: {}]   ;;  %s1323_s2 = inlined_call_operand.vmem [shape: f32[3,24,48], index: 2, kind: input, shape index: {}]   ;;  %s1324_s3 = inlined_call_operand.vmem [shape: f32[24,1], index: 3, kind: input, shape index: {}]   ;;  %s1325_s4 = inlined_call_operand.vmem [shape: s32[1,256], index: 4, kind: input, shape index: {}]   ;;  %s1326_s5 = inlined_call_operand.vmem [shape: s32[1,256], index: 5, kind: input, shape index: {}]   ;;  %s1327_s6 = inlined_call_operand.vmem [shape: f32[2,24,256], index: 6, kind: output, shape index: {}]  }
   0x1 LB: > { %s874_s22 = sadd.s32 4294967295, %s930_s21   ;;  %p878_p0 = scmp.ge.s32.totalorder %s930_s21, 1  ;;  %s930_s21 = sphi %s973_s21, %s16_s21  }
   0x2   : > { %p220_p1 = scmp.lt.s32.totalorder %s930_s21, 3 }
   0x4   : > { %p221_p2 = pnand %p878_p0, %p220_p1 }
   0x5   : > { %p253_p3 = scmp.lt.s32.totalorder (!%p221_p2), %s874_s22, 1  ;;  %s933_s27 = smov (!%p221_p2), 127  }
   0x6   : > { %224 = sbr.rel (%p221_p2) target bundleno = 504 (0x1f8), region = 44  ;;  %s934_s28 = smov (!%p221_p2), 1  }
   0x7   : > { %s935_s29 = smov (!%p221_p2), 16   ;;  %s936_s30 = smov (!%p221_p2), 112  }
   0xb   : > { %v932_v0 = vmov 0   ;;  %s1343_s22 = smov (!%p253_p3, %s874_s22), 1  ;;  %v299_v5 = vlaneseq  ;;  %v296_v6 = vld [vmem:[%s1326_s5] sm:$0x3]  ;;  %v937_v16 = vmov 0.0   ;;  %v273_v42 = vld [vmem:[%s1323_s2 + $0x18] sm:$0xff] }
   0xc   : > { %922 = vset.pattern.permute.xlu0 %v932_v0  ;;  %923 = vset.pattern.permute.xlu1 %v932_v0  ;;  %s894_s23 = sshll.u32 %s1343_s22, 5  ;;  %vm309_vm0 = vcmp.eq.s32.totalorder %v296_v6, 15  ;;  %vm297_vm5 = vcmp.eq.s32.totalorder %v296_v6, 0  ;;  %s255_s11 = scalar_lea.vmem %s1321_s0, %s1343_s22  ;;  %vm479_vm8 = vcmask 392192   ;;  %v274_v47 = vld [vmem:[%s1323_s2 + $0x20] sm:$0xff]  ;;  %v275_v50 = vld [vmem:[%s1323_s2 + $0x28] sm:$0xff] }
   0xd   : > { %s260_s26 = scalar_lea.vmem %s1322_s1, %s894_s23  ;;  %v300_v7 = vshrl.u32 %v299_v5, 7  ;;  %v310_v10 = vsel %vm309_vm0, 1, %v932_v0  ;;  %v1029_v11 = vand.u32 127, %v299_v5  ;;  %553 = vmatprep.mubr.f32.mxu0 %v937_v16  ;;  %645 = vmatprep.mubr.f32.mxu1 %v937_v16  ;;  %v298_v29 = vsel %vm297_vm5, 1, %v932_v0  ;;  %v1083_v40 = vld [vmem:[%s255_s11] ss:$0 sm:$0xff] }
   0xe   : > { %v989_v1 = vld [vmem:[%s260_s26 + $0x10] sm:$0xff]  ;;  %v993_v2 = vld [vmem:[%s260_s26 + $0x18] sm:$0xff]  ;;  %v997_v3 = vld [vmem:[%s260_s26 + $0x8] sm:$0xff]  ;;  %v289_v45 = vmul.f32 %v1083_v40, %v273_v42  ;;  %v290_v49 = vmul.f32 %v1083_v40, %v274_v47  ;;  %v291_v51 = vmul.f32 %v1083_v40, %v275_v50  ;;  %s907_s16 = smul.u32 48, %s1343_s22 }
   0xf   : > { %362 = vrot.lane.b32.xlu1 %v989_v1, %s933_s27  ;;  %347 = vrot.lane.b32.xlu0 %v989_v1, %s934_s28  ;;  %v999_v4 = vld [vmem:[%s260_s26] sm:$0xff]  ;;  %v1024_v8 = vsub.s32 1, %v300_v7  ;;  %v1026_v9 = vsub.s32 0, %v300_v7  ;;  %vm368_vm1 = vcmp.lt.s32.totalorder %v1029_v11, 127  ;;  %vm355_vm2 = vcmp.lt.s32.totalorder %v1029_v11, 1  ;;  %v763_v53 = vld [vmem:[%s1324_s3 + $0x8] sm:$0xff] }
  0x10   : > { %v762_v52 = vld [vmem:[%s1324_s3] sm:$0xff]  ;;  %v764_v54 = vld [vmem:[%s1324_s3 + $0x10] sm:$0xff]  ;;  %vm405_vm11 = vcmp.lt.s32.totalorder %v1029_v11, 16  ;;  %vm442_vm12 = vcmp.lt.s32.totalorder %v1029_v11, 112  ;;  %s1310_s19 = scalar_lea.vmem %s1327_s6, %s907_s16 }
  0x11   : > { %v318_v12 = vrot.slane %v310_v10, %v1024_v8  ;;  %v314_v13 = vrot.slane %v310_v10, %v1026_v9  ;;  %v306_v32 = vrot.slane %v298_v29, %v1024_v8  ;;  %v302_v39 = vrot.slane %v298_v29, %v1026_v9  ;;  %v295_v61 = vld [vmem:[%s1325_s4] sm:$0x3] }
  0x12   : > { %vm321_vm9 = vcmp.eq.s32.totalorder %v295_v61, 0  ;;  %vm333_vm10 = vcmp.eq.s32.totalorder %v295_v61, 15 }
  0x13   : > { %366 = vrot.lane.b32.xlu1 %v993_v2, %s933_s27  ;;  %351 = vrot.lane.b32.xlu0 %v993_v2, %s934_s28  ;;  %vm1037_vm3 = vcmp.eq.s32.totalorder %v318_v12, 1  ;;  %vm1041_vm4 = vcmp.eq.s32.totalorder %v314_v13, 1  ;;  %vm308_vm6 = vcmp.eq.s32.totalorder %v306_v32, 1  ;;  %vm1086_vm7 = vcmp.eq.s32.totalorder %v302_v39, 1 }
  0x17   : > { %349 = vrot.lane.b32.xlu1 %v997_v3, %s934_s28  ;;  %345 = vrot.lane.b32.xlu0 %v999_v4, %s934_s28 }
  0x1b   : > { %364 = vrot.lane.b32.xlu1 %v997_v3, %s933_s27  ;;  %360 = vrot.lane.b32.xlu0 %v999_v4, %s933_s27 }
  0x1f   : > { %399 = vrot.lane.b32.xlu1 %v993_v2, %s935_s29  ;;  %387 = vrot.lane.b32.xlu0 %v989_v1, %s935_s29 }
  0x23   : > { %436 = vrot.lane.b32.xlu1 %v993_v2, %s936_s30  ;;  %424 = vrot.lane.b32.xlu0 %v989_v1, %s936_s30 }
  0x27   : > { %397 = vrot.lane.b32.xlu1 %v997_v3, %s935_s29  ;;  %385 = vrot.lane.b32.xlu0 %v999_v4, %s935_s29 }
  0x2b   : > { %434 = vrot.lane.b32.xlu1 %v997_v3, %s936_s30  ;;  %422 = vrot.lane.b32.xlu0 %v999_v4, %s936_s30 }
  0x81   : > { %v363_v14 = vpop.permute.xlu1 %362  ;;  %v348_v15 = vpop.permute.xlu0 %347 }
  0x85   : > { %v367_v19 = vpop.permute.xlu1 %366  ;;  %v352_v20 = vpop.permute.xlu0 %351 }
  0x86   : > { %v370_v21 = vsel %vm368_vm1, %v363_v14, %v367_v19  ;;  %v372_v22 = vsel %vm368_vm1, %v367_v19, %v363_v14  ;;  %v357_v23 = vsel %vm355_vm2, %v348_v15, %v352_v20  ;;  %v359_v24 = vsel %vm355_vm2, %v352_v20, %v348_v15  ;;  %v272_v14 = vld [vmem:[%s1323_s2 + $0x10] sm:$0xff] }
  0x87   : > { %v380_v25 = vsel %vm1037_vm3, %v357_v23, %v372_v22  ;;  %v379_v26 = vsel %vm1041_vm4, %v359_v24, %v370_v21  ;;  %v376_v43 = vsel %vm308_vm6, %v372_v22, %v357_v23  ;;  %v375_v44 = vsel %vm1086_vm7, %v370_v21, %v359_v24 }
  0x88   : > { %509 = vmatprep.subr.mxu0 %v380_v25  ;;  %403 = vrot.lane.b32.xlu1 %v380_v25, %s935_s29 }
  0x89   : > { %391 = vrot.lane.b32.xlu0 %v379_v26, %s935_s29  ;;  %510 = vmatpush1.msra.mxu0 %v379_v26  ;;  %v350_v27 = vpop.permute.xlu1 %349  ;;  %v346_v28 = vpop.permute.xlu0 %345 }
  0x8a   : > { %v356_v33 = vsel %vm355_vm2, %v346_v28, %v350_v27  ;;  %v358_v34 = vsel %vm355_vm2, %v350_v27, %v346_v28 }
  0x8c   : > { %440 = vrot.lane.b32.xlu1 %v380_v25, %s936_s30 }
  0x8d   : > { %428 = vrot.lane.b32.xlu0 %v379_v26, %s936_s30  ;;  %v365_v30 = vpop.permute.xlu1 %364  ;;  %v361_v31 = vpop.permute.xlu0 %360 }
  0x8e   : > { %v369_v35 = vsel %vm368_vm1, %v361_v31, %v365_v30  ;;  %v371_v36 = vsel %vm368_vm1, %v365_v30, %v361_v31 }
  0x8f   : > { %v378_v37 = vsel %vm1037_vm3, %v356_v33, %v371_v36  ;;  %v377_v38 = vsel %vm1041_vm4, %v358_v34, %v369_v35  ;;  %v374_v46 = vsel %vm308_vm6, %v371_v36, %v356_v33  ;;  %v373_v48 = vsel %vm1086_vm7, %v369_v35, %v358_v34 }
  0x90   : > { %401 = vrot.lane.b32.xlu1 %v378_v37, %s935_s29  ;;  %511 = vmatprep.subr.mxu0 %v378_v37 }
  0x91   : > { %389 = vrot.lane.b32.xlu0 %v377_v38, %s935_s29  ;;  %512 = vmatpush1.msra.mxu0 %v377_v38  ;;  %v400_v55 = vpop.permute.xlu1 %399  ;;  %v388_v56 = vpop.permute.xlu0 %387 }
  0x92   : > { %513 = vmatprep.subr.mxu0 %v993_v2  ;;  %v334_v2 = vsel %vm333_vm10, 1, %v932_v0  ;;  %v409_v27 = vsel %vm405_vm11, %v388_v56, %v400_v55  ;;  %v415_v28 = vsel %vm405_vm11, %v400_v55, %v388_v56 }
  0x93   : > { %514 = vmatpush1.msra.mxu0 %v989_v1  ;;  %v322_v1 = vsel %vm321_vm9, 1, %v932_v0  ;;  %v342_v6 = vrot.slane %v334_v2, %v1024_v8  ;;  %v338_v10 = vrot.slane %v334_v2, %v1026_v9  ;;  %v288_v0 = vmul.f32 %v1083_v40, %v272_v14 }
  0x94   : > { %438 = vrot.lane.b32.xlu1 %v378_v37, %s936_s30  ;;  %515 = vmatprep.subr.mxu0 %v997_v3  ;;  %v330_v5 = vrot.slane %v322_v1, %v1024_v8  ;;  %v326_v7 = vrot.slane %v322_v1, %v1026_v9  ;;  %v277_v8 = vld [vmem:[%s1323_s2 + $0x38] sm:$0xff] }
  0x95   : > { %426 = vrot.lane.b32.xlu0 %v377_v38, %s936_s30  ;;  %516 = vmatpush1.msra.mxu0 %v999_v4  ;;  %v437_v57 = vpop.permute.xlu1 %436  ;;  %v425_v58 = vpop.permute.xlu0 %424  ;;  %vm1148_vm14 = vcmp.eq.s32.totalorder %v342_v6, 1  ;;  %vm1156_vm0 = vcmp.eq.s32.totalorder %v338_v10, 1  ;;  %v293_v9 = vmul.f32 %v1083_v40, %v277_v8 }
  0x96   : > { %517 = vmatprep.subr.mxu0 %v376_v43  ;;  %vm1144_vm13 = vcmp.eq.s32.totalorder %v330_v5, 1  ;;  %vm1152_vm15 = vcmp.eq.s32.totalorder %v326_v7, 1  ;;  %v446_v29 = vsel %vm442_vm12, %v425_v58, %v437_v57  ;;  %v452_v30 = vsel %vm442_vm12, %v437_v57, %v425_v58  ;;  %v276_v5 = vld [vmem:[%s1323_s2 + $0x30] sm:$0xff] }
  0x97   : > { %518 = vmatpush1.msra.mxu0 %v375_v44  ;;  %v473_v50 = vsel %vm1156_vm0, %v415_v28, %v446_v29 }
  0x98   : > { %395 = vrot.lane.b32.xlu1 %v376_v43, %s935_s29  ;;  %519 = vmatprep.subr.mxu0 %v374_v46 }
  0x99   : > { %383 = vrot.lane.b32.xlu0 %v375_v44, %s935_s29  ;;  %520 = vmatpush1.msra.mxu0 %v373_v48  ;;  %v398_v59 = vpop.permute.xlu1 %397  ;;  %v386_v60 = vpop.permute.xlu0 %385 }
  0x9a   : > { %883 = vmatmul.mubr.msk.f32.vlgmr.msra.gmra.mxu0 %vm479_vm8, %v289_v45  ;;  %v408_v41 = vsel %vm405_vm11, %v386_v60, %v398_v59  ;;  %v414_v45 = vsel %vm405_vm11, %v398_v59, %v386_v60 }
  0x9b   : > { %559 = vmatprep.mubr.f32.mxu0 %v937_v16 }
  0x9c   : > { %432 = vrot.lane.b32.xlu1 %v376_v43, %s936_s30 }
  0x9d   : > { %420 = vrot.lane.b32.xlu0 %v375_v44, %s936_s30  ;;  %v435_v62 = vpop.permute.xlu1 %434  ;;  %v423_v63 = vpop.permute.xlu0 %422  ;;  %v462_v44 = vsel %vm1144_vm13, %v452_v30, %v409_v27 }
  0x9e   : > { %884 = vmatmul.mubr.msk.f32.gmra.mxu0 %vm479_vm8, %v290_v49  ;;  %v451_v42 = vsel %vm442_vm12, %v435_v62, %v423_v63  ;;  %v461_v49 = vsel %vm1152_vm15, %v446_v29, %v415_v28 }
  0x9f   : > { %565 = vmatprep.mubr.f32.mxu0 %v937_v16 }
  0xa0   : > { %393 = vrot.lane.b32.xlu1 %v374_v46, %s935_s29 }
  0xa1   : > { %381 = vrot.lane.b32.xlu0 %v373_v48, %s935_s29 }
  0xa2   : > { %885 = vmatmul.mubr.msk.f32.gmra.mxu0 %vm479_vm8, %v291_v51  ;;  %v460_v51 = vsel %vm1144_vm13, %v451_v42, %v408_v41 }
  0xa3   : > { %737 = vmatprep.mubr.f32.mxu0 %v937_v16 }
  0xa4   : > { %430 = vrot.lane.b32.xlu1 %v374_v46, %s936_s30  ;;  %v445_v46 = vsel %vm442_vm12, %v423_v63, %v435_v62 }
  0xa5   : > { %418 = vrot.lane.b32.xlu0 %v373_v48, %s936_s30  ;;  %v474_v48 = vsel %vm1148_vm14, %v409_v27, %v452_v30  ;;  %v471_v55 = vsel %vm1156_vm0, %v414_v45, %v445_v46 }
  0xa8   : > { %772 = vperm.xlu1 %923, %v763_v53  }
  0xa9   : > { %767 = vperm.xlu0 %922, %v762_v52   ;;  %v472_v52 = vsel %vm1148_vm14, %v408_v41, %v451_v42 }
  0xac   : > { %777 = vperm.xlu1 %923, %v764_v54   ;;  %v459_v54 = vsel %vm1152_vm15, %v445_v46, %v414_v45 }
  0xfa   : > { %v404_v3 = vpop.permute.xlu1 %403 }
  0xfb   : > { %v392_v4 = vpop.permute.xlu0 %391 }
  0xfc   : > { %v411_v15 = vsel %vm405_vm11, %v392_v4, %v404_v3  ;;  %v417_v17 = vsel %vm405_vm11, %v404_v3, %v392_v4  ;;  %v270_v4 = vld [vmem:[%s1323_s2] sm:$0xff] }
  0xfd   : > { %v286_v10 = vmul.f32 %v1083_v40, %v270_v4 }
  0xfe   : > { %v441_v12 = vpop.permute.xlu1 %440 }
  0xff   : > { %v429_v13 = vpop.permute.xlu0 %428 }
 0x100   : > { %v448_v18 = vsel %vm442_vm12, %v429_v13, %v441_v12  ;;  %v454_v19 = vsel %vm442_vm12, %v441_v12, %v429_v13  ;;  %v292_v12 = vmul.f32 %v1083_v40, %v276_v5 }
 0x101   : > { %v466_v20 = vsel %vm1144_vm13, %v454_v19, %v411_v15  ;;  %v1172_v21 = vsel %vm1148_vm14, %v411_v15, %v454_v19  ;;  %v465_v22 = vsel %vm1152_vm15, %v448_v18, %v417_v17  ;;  %v1178_v23 = vsel %vm1156_vm0, %v417_v17, %v448_v18 }
 0x102   : > { %601 = vmatprep.subr.mxu1 %v466_v20  ;;  %693 = vmatprep.subr.mxu0 %v1172_v21  ;;  %v402_v24 = vpop.permute.xlu1 %401 }
 0x103   : > { %602 = vmatpush1.msra.mxu1 %v465_v22  ;;  %v390_v25 = vpop.permute.xlu0 %389  ;;  %694 = vmatpush1.msra.mxu0 %v1178_v23 }
 0x104   : > { %v410_v32 = vsel %vm405_vm11, %v390_v25, %v402_v24  ;;  %v416_v33 = vsel %vm405_vm11, %v402_v24, %v390_v25  ;;  %v271_v25 = vld [vmem:[%s1323_s2 + $0x8] sm:$0xff] }
 0x105   : > { %v287_v11 = vmul.f32 %v1083_v40, %v271_v25 }
 0x106   : > { %v439_v26 = vpop.permute.xlu1 %438 }
 0x107   : > { %v427_v31 = vpop.permute.xlu0 %426 }
 0x108   : > { %v447_v34 = vsel %vm442_vm12, %v427_v31, %v439_v26  ;;  %v453_v35 = vsel %vm442_vm12, %v439_v26, %v427_v31 }
 0x109   : > { %v464_v36 = vsel %vm1144_vm13, %v453_v35, %v410_v32  ;;  %v1202_v37 = vsel %vm1148_vm14, %v410_v32, %v453_v35  ;;  %v463_v38 = vsel %vm1152_vm15, %v447_v34, %v416_v33  ;;  %v1208_v39 = vsel %vm1156_vm0, %v416_v33, %v447_v34 }
 0x10a   : > { %603 = vmatprep.subr.mxu1 %v464_v36  ;;  %695 = vmatprep.subr.mxu0 %v1202_v37  ;;  %v396_v43 = vpop.permute.xlu1 %395 }
 0x10b   : > { %604 = vmatpush1.msra.mxu1 %v463_v38  ;;  %v384_v47 = vpop.permute.xlu0 %383  ;;  %696 = vmatpush1.msra.mxu0 %v1208_v39 }
 0x10c   : > { %605 = vmatprep.subr.mxu1 %v462_v44  ;;  %697 = vmatprep.subr.mxu0 %v474_v48  ;;  %v407_v57 = vsel %vm405_vm11, %v384_v47, %v396_v43  ;;  %v413_v58 = vsel %vm405_vm11, %v396_v43, %v384_v47 }
 0x10d   : > { %606 = vmatpush1.msra.mxu1 %v461_v49  ;;  %698 = vmatpush1.msra.mxu0 %v473_v50 }
 0x10e   : > { %607 = vmatprep.subr.mxu1 %v460_v51  ;;  %699 = vmatprep.subr.mxu0 %v472_v52  ;;  %v433_v53 = vpop.permute.xlu1 %432 }
 0x10f   : > { %608 = vmatpush1.msra.mxu1 %v459_v54  ;;  %v421_v56 = vpop.permute.xlu0 %420  ;;  %700 = vmatpush1.msra.mxu0 %v471_v55 }
 0x110   : > { %v444_v59 = vsel %vm442_vm12, %v421_v56, %v433_v53  ;;  %v450_v60 = vsel %vm442_vm12, %v433_v53, %v421_v56 }
 0x111   : > { %v458_v61 = vsel %vm1144_vm13, %v450_v60, %v407_v57  ;;  %v470_v62 = vsel %vm1148_vm14, %v407_v57, %v450_v60  ;;  %v457_v63 = vsel %vm1152_vm15, %v444_v59, %v413_v58  ;;  %v469_v1 = vsel %vm1156_vm0, %v413_v58, %v444_v59 }
 0x112   : > { %609 = vmatprep.subr.mxu1 %v458_v61  ;;  %701 = vmatprep.subr.mxu0 %v470_v62  ;;  %v394_v2 = vpop.permute.xlu1 %393 }
 0x113   : > { %610 = vmatpush1.msra.mxu1 %v457_v63  ;;  %v382_v3 = vpop.permute.xlu0 %381  ;;  %702 = vmatpush1.msra.mxu0 %v469_v1 }
 0x114   : > { %v406_v13 = vsel %vm405_vm11, %v382_v3, %v394_v2  ;;  %v412_v15 = vsel %vm405_vm11, %v394_v2, %v382_v3 }
 0x116   : > { %v431_v6 = vpop.permute.xlu1 %430 }
 0x117   : > { %v419_v7 = vpop.permute.xlu0 %418 }
 0x118   : > { %v443_v17 = vsel %vm442_vm12, %v419_v7, %v431_v6  ;;  %v449_v18 = vsel %vm442_vm12, %v431_v6, %v419_v7 }
 0x119   : > { %v456_v19 = vsel %vm1144_vm13, %v449_v18, %v406_v13  ;;  %v468_v20 = vsel %vm1148_vm14, %v406_v13, %v449_v18  ;;  %v455_v22 = vsel %vm1152_vm15, %v443_v17, %v412_v15  ;;  %v467_v24 = vsel %vm1156_vm0, %v412_v15, %v443_v17 }
 0x11a   : > { %611 = vmatprep.subr.mxu1 %v456_v19  ;;  %703 = vmatprep.subr.mxu0 %v468_v20 }
 0x11b   : > { %612 = vmatpush1.msra.mxu1 %v455_v22  ;;  %704 = vmatpush1.msra.mxu0 %v467_v24 }
 0x11c   : > { %886 = vmatmul.mubr.msk.f32.vlgmr.msra.gmra.mxu1 %vm479_vm8, %v286_v10  ;;  %895 = vmatprep.subr.mxu1 %v1172_v21  ;;  %v278_v21 = vld [vmem:[%s1323_s2 + $0x40] sm:$0xff] }
 0x11d   : > { %901 = vmatpush1.msra.mxu1 %v1178_v23  ;;  %889 = vmatmul.mubr.msk.f32.vlgmr.msra.gmra.mxu0 %vm479_vm8, %v292_v12  ;;  %v294_v23 = vmul.f32 %v1083_v40, %v278_v21 }
 0x11e   : > { %896 = vmatprep.subr.mxu1 %v1202_v37  ;;  %651 = vmatprep.mubr.f32.mxu1 %v937_v16 }
 0x11f   : > { %902 = vmatpush1.msra.mxu1 %v1208_v39 }
 0x120   : > { %887 = vmatmul.mubr.msk.f32.gmra.mxu1 %vm479_vm8, %v287_v11  ;;  %897 = vmatprep.subr.mxu1 %v474_v48 }
 0x121   : > { %903 = vmatpush1.msra.mxu1 %v473_v50  ;;  %657 = vmatprep.mubr.f32.mxu1 %v937_v16 }
 0x122   : > { %898 = vmatprep.subr.mxu1 %v472_v52 }
 0x123   : > { %904 = vmatpush1.msra.mxu1 %v471_v55  ;;  %v773_v52 = vpop.permute.xlu1 %772 }
 0x124   : > { %888 = vmatmul.mubr.msk.f32.gmra.mxu1 %vm479_vm8, %v288_v0  ;;  %899 = vmatprep.subr.mxu1 %v470_v62  ;;  %v768_v36 = vpop.permute.xlu0 %767 }
 0x125   : > { %905 = vmatpush1.msra.mxu1 %v469_v1  ;;  %743 = vmatprep.mubr.f32.mxu1 %v937_v16 }
 0x126   : > { %900 = vmatprep.subr.mxu1 %v468_v20 }
 0x127   : > { %906 = vmatpush1.msra.mxu1 %v467_v24  ;;  %v778_v1 = vpop.permute.xlu1 %777 }
 0x128   : > { %890 = vmatmul.mubr.msk.f32.vlgmr.msra.gmra.mxu1 %vm479_vm8, %v293_v9 }
 0x129   : > { %749 = vmatprep.mubr.f32.mxu1 %v937_v16 }
 0x12c   : > { %891 = vmatmul.mubr.msk.f32.gmra.mxu1 %vm479_vm8, %v294_v23 }
 0x15a   : > { %v555_v26 = vpop.f32.mrf.mxu0 }
 0x15c   : > { %v557_v27 = vpop.f32.mrf.mxu0 }
 0x15e   : > { %v561_v28 = vpop.f32.mrf.mxu0 }
 0x160   : > { %v563_v29 = vpop.f32.mrf.mxu0 }
 0x162   : > { %v567_v30 = vpop.f32.mrf.mxu0 }
 0x164   : > { %v569_v31 = vpop.f32.mrf.mxu0 }
 0x1dc   : > { %v647_v32 = vpop.f32.mrf.mxu1 }
 0x1dd   : > { %v648_v33 = vadd.f32 %v647_v32, %v555_v26  ;;  %v739_v34 = vpop.f32.mrf.mxu0 }
 0x1de   : > { %v649_v35 = vpop.f32.mrf.mxu1 }
 0x1df   : > { %v650_v37 = vadd.f32 %v649_v35, %v557_v27  ;;  %v756_v38 = vadd.f32 %v739_v34, %v648_v33  ;;  %v741_v40 = vpop.f32.mrf.mxu0 }
 0x1e0   : > { %v653_v39 = vpop.f32.mrf.mxu1 }
 0x1e1   : > { %v780_v41 = vadd.f32 %v768_v36, %v756_v38  ;;  %v757_v16 = vadd.f32 %v741_v40, %v650_v37  ;;  %v654_v49 = vadd.f32 %v653_v39, %v561_v28 }
 0x1e2   : > { %v655_v42 = vpop.f32.mrf.mxu1 }
 0x1e3   : > { %vm786_vm1 = vcmp.gt.f32.partialorder %v780_v41, 0.0  ;;  %v792_v43 = vmul.f32 0.2, %v780_v41  ;;  %v781_v44 = vadd.f32 %v768_v36, %v757_v16  ;;  %v656_v53 = vadd.f32 %v655_v42, %v563_v29 }
 0x1e4   : > { %v659_v45 = vpop.f32.mrf.mxu1 }
 0x1e5   : > { %v798_v46 = vsel %vm786_vm1, %v780_v41, %v792_v43  ;;  %vm787_vm2 = vcmp.gt.f32.partialorder %v781_v44, 0.0  ;;  %v793_v47 = vmul.f32 0.2, %v781_v44  ;;  %v660_v56 = vadd.f32 %v659_v45, %v567_v30 }
 0x1e6   : > { %804 = vst [vmem:[%s1310_s19] sm:$0xff] %v798_v46  ;;  %v661_v48 = vpop.f32.mrf.mxu1 }
 0x1e7   : > { %v799_v50 = vsel %vm787_vm2, %v781_v44, %v793_v47  ;;  %v662_v63 = vadd.f32 %v661_v48, %v569_v31 }
 0x1e8   : > { %805 = vst [vmem:[%s1310_s19 + $0x8] sm:$0xff] %v799_v50  ;;  %v745_v51 = vpop.f32.mrf.mxu1 }
 0x1e9   : > { %v758_v54 = vadd.f32 %v745_v51, %v654_v49 }
 0x1ea   : > { %v747_v55 = vpop.f32.mrf.mxu1 }
 0x1eb   : > { %v782_v57 = vadd.f32 %v773_v52, %v758_v54  ;;  %v759_v58 = vadd.f32 %v747_v55, %v656_v53 }
 0x1ec   : > { %v751_v59 = vpop.f32.mrf.mxu1 }
 0x1ed   : > { %vm788_vm3 = vcmp.gt.f32.partialorder %v782_v57, 0.0  ;;  %v794_v60 = vmul.f32 0.2, %v782_v57  ;;  %v783_v61 = vadd.f32 %v773_v52, %v759_v58  ;;  %v760_v62 = vadd.f32 %v751_v59, %v660_v56 }
 0x1ee   : > { %v753_v2 = vpop.f32.mrf.mxu1 }
 0x1ef   : > { %v800_v3 = vsel %vm788_vm3, %v782_v57, %v794_v60  ;;  %vm789_vm4 = vcmp.gt.f32.partialorder %v783_v61, 0.0  ;;  %v795_v4 = vmul.f32 0.2, %v783_v61  ;;  %v784_v5 = vadd.f32 %v778_v1, %v760_v62 }
 0x1f0   : > { %806 = vst [vmem:[%s1310_s19 + $0x10] sm:$0xff] %v800_v3  ;;  %v761_v6 = vadd.f32 %v753_v2, %v662_v63 }
 0x1f1   : > { %v801_v7 = vsel %vm789_vm4, %v783_v61, %v795_v4  ;;  %vm790_vm5 = vcmp.gt.f32.partialorder %v784_v5, 0.0  ;;  %v796_v10 = vmul.f32 0.2, %v784_v5 }
 0x1f2   : > { %807 = vst [vmem:[%s1310_s19 + $0x18] sm:$0xff] %v801_v7  ;;  %v785_v12 = vadd.f32 %v778_v1, %v761_v6 }
 0x1f3   : > { %v802_v13 = vsel %vm790_vm5, %v784_v5, %v796_v10 }
 0x1f4   : > { %808 = vst [vmem:[%s1310_s19 + $0x20] sm:$0xff] %v802_v13  ;;  %vm791_vm6 = vcmp.gt.f32.partialorder %v785_v12, 0.0  ;;  %v797_v15 = vmul.f32 0.2, %v785_v12 }
 0x1f6   : > { %v803_v17 = vsel %vm791_vm6, %v785_v12, %v797_v15 }
 0x1f7   : > { %809 = vst [vmem:[%s1310_s19 + $0x28] sm:$0xff] %v803_v17 }
 0x1f8 PF: > { %s16_s21 = sadd.s32 1, %s930_s21  }
 0x1f9   : > { %p13_p4 = scmp.ge.s32.totalorder %s16_s21, 4  }
 0x1fb   :  { %15 = sbr.rel (!%p13_p4) target bundleno = 1 (0x1), region = 77 }

</bundles_post_ra>
